<compile_context>
chip_gen: v6e
topology: v6e:2x2x1
jax: 0.10.0
libtpu: 0.0.40
codegen_flags: <defaults>
</compile_context>

<pallas_src>
import functools

import jax
import jax.numpy as jnp
import numpy as np
from jax.experimental import pallas as pl
from jax.experimental.pallas import tpu as pltpu

_HIDDEN = 64


def _round_up(x, m):
    return ((x + m - 1) // m) * m


def _physical_vmem_bytes():
    try:
        return int(pltpu.get_tpu_info().vmem_capacity_bytes)
    except Exception:
        return 64 * 1024 * 1024  # conservative fallback (v7x-sized)


def _finalize(acc, b1_ref, w2_ref, b2_ref, o_ref):
    # acc: (tile_n, 64) f32 pre-bias first-layer output.
    h = jnp.maximum(acc + b1_ref[...], 0.0)                         # bias + ReLU
    # 64 -> 1 layer as VPU mul + lane reduce (keeps the MXU out of it).
    logit = jnp.sum(h * w2_ref[...], axis=-1, keepdims=True) + b2_ref[0]
    # Numerically stable sigmoid: exp of a non-positive argument only.
    p = jnp.exp(-jnp.abs(logit))
    inv = 1.0 / (1.0 + p)
    o_ref[...] = jnp.where(logit >= 0.0, inv, 1.0 - inv)


def _disc_kernel(xp_ref, xe_ref, w1a_ref, w1b_ref, b1_ref, w2_ref, b2_ref,
                 o_ref, *scratch, V, tile_k, n_k, mask_tail_k,
                 weights_resident, compute_dtype):
    # xp_ref / xe_ref : (tile_n, tile_k) activation tiles (f32)
    # w1a_ref / w1b_ref: resident (v_pad, 64) or tiled (tile_k, 64)
    # b1_ref: (1, 64)   w2_ref: (1, 64)   b2_ref: (1,) in SMEM
    # o_ref : (tile_n, 1)   scratch: optional (tile_n, 64) f32 accumulator
    k = pl.program_id(1)

    xp = xp_ref[...]
    xe = xe_ref[...]
    if mask_tail_k:
        # Zero the undefined columns of the partial tail K tile (cols >= V).
        col = jax.lax.broadcasted_iota(jnp.int32, (1, tile_k), 1) + k * tile_k
        valid = col < V
        xp = jnp.where(valid, xp, 0.0)
        xe = jnp.where(valid, xe, 0.0)

    if weights_resident:
        off = pl.multiple_of(k * tile_k, tile_k)
        w1a = w1a_ref[pl.ds(off, tile_k), :]
        w1b = w1b_ref[pl.ds(off, tile_k), :]
    else:
        w1a = w1a_ref[...]
        w1b = w1b_ref[...]

    if compute_dtype != jnp.float32:
        xp = xp.astype(compute_dtype)
        xe = xe.astype(compute_dtype)
        w1a = w1a.astype(compute_dtype)
        w1b = w1b.astype(compute_dtype)

    if n_k == 1:
        # Single-K specialization: no accumulator scratch round trip.
        h = jnp.dot(xp, w1a, preferred_element_type=jnp.float32)
        h = h + jnp.dot(xe, w1b, preferred_element_type=jnp.float32)
        _finalize(h, b1_ref, w2_ref, b2_ref, o_ref)
    else:
        acc_ref = scratch[0]

        @pl.when(k == 0)
        def _init():
            acc_ref[...] = jnp.zeros_like(acc_ref)

        # Two separate accumulating updates (shorter MXU-result live ranges).
        acc_ref[...] += jnp.dot(xp, w1a, preferred_element_type=jnp.float32)
        acc_ref[...] += jnp.dot(xe, w1b, preferred_element_type=jnp.float32)

        @pl.when(k == n_k - 1)
        def _fin():
            _finalize(acc_ref[...], b1_ref, w2_ref, b2_ref, o_ref)


def self_eval_comparator(predicted_probs, expected_probs, params, *,
                         tile_n_max=None, tile_k_max=None,
                         compute_dtype=jnp.float32):
    """predicted_probs, expected_probs: (B, S, V) f32 -> (B, S, 1) f32."""
    w1, b1, w2, b2 = params            # (2V, 64), (1, 64), (64, 1), (1, 1)
    B, S, V = predicted_probs.shape
    N = B * S

    xp = predicted_probs.reshape(N, V)
    xe = expected_probs.reshape(N, V)
    w1a = w1[:V]                       # weights acting on the predicted half
    w1b = w1[V:]                       # weights acting on the expected half
    b1 = b1.reshape(1, _HIDDEN)
    w2_row = w2.reshape(1, _HIDDEN)
    b2_s = b2.reshape(1)

    # --- generation-aware tile / VMEM budgets ---
    phys_vmem = _physical_vmem_bytes()
    if phys_vmem >= 96 * (1 << 20):        # v5e / v6e: 128 MiB physical VMEM
        vmem_cap = 100 * (1 << 20)
        dflt_tn, dflt_tk = 1024, 2048
    else:                                  # v7x: 64 MiB physical VMEM
        vmem_cap = 52 * (1 << 20)
        dflt_tn, dflt_tk = 1024, 1024
    tile_n_max = dflt_tn if tile_n_max is None else tile_n_max
    tile_k_max = dflt_tk if tile_k_max is None else tile_k_max

    # --- N tiling: no padding; tail rows are garbage that never leaves the
    #     (N, 1) output.  Keep >= 2 N tiles when possible so the "parallel"
    #     axis actually splits across both v7x TensorCores.
    tile_n = max(8, min(tile_n_max, _round_up(pl.cdiv(N, 2), 8)))
    grid_n = pl.cdiv(N, tile_n)

    # --- K (vocab) tiling: full vocab in one tile when it fits, otherwise
    #     128-multiple tiles with in-kernel masking of the tail tile.  Only
    #     the small w1 halves get zero-padded.
    if V <= tile_k_max:
        tile_k, n_k, v_pad = V, 1, V
        mask_tail_k = False
    else:
        tile_k = tile_k_max                # multiple of 128
        n_k = pl.cdiv(V, tile_k)
        v_pad = n_k * tile_k
        mask_tail_k = (V % tile_k) != 0
        if v_pad != V:
            w1a = jnp.pad(w1a, ((0, v_pad - V), (0, 0)))
            w1b = jnp.pad(w1b, ((0, v_pad - V), (0, 0)))

    # --- weight residency: keep both w1 halves in VMEM across the whole grid
    #     (never re-fetched per N tile) when they fit the budget.
    act_bytes = 2 * 2 * tile_n * tile_k * 4            # xp/xe, double-buffered
    misc_bytes = tile_n * _HIDDEN * 4 + 2 * 2 * tile_n * 4 + (1 << 16)
    resident_w_bytes = 2 * 2 * v_pad * _HIDDEN * 4
    tiled_w_bytes = 2 * 2 * tile_k * _HIDDEN * 4
    weights_resident = (n_k > 1 and
                        act_bytes + resident_w_bytes + misc_bytes <= vmem_cap)
    w_bytes = resident_w_bytes if weights_resident else tiled_w_bytes

    need = act_bytes + w_bytes + misc_bytes
    vmem_limit = int(min(max(need + need // 4, 32 * (1 << 20)), vmem_cap))

    if weights_resident:
        w_spec = pl.BlockSpec((v_pad, _HIDDEN), lambda i, k: (0, 0))
    else:
        w_spec = pl.BlockSpec((tile_k, _HIDDEN), lambda i, k: (k, 0))

    kernel = functools.partial(
        _disc_kernel, V=V, tile_k=tile_k, n_k=n_k, mask_tail_k=mask_tail_k,
        weights_resident=weights_resident, compute_dtype=compute_dtype)

    scratch = [] if n_k == 1 else [pltpu.VMEM((tile_n, _HIDDEN), jnp.float32)]

    out = pl.pallas_call(
        kernel,
        out_shape=jax.ShapeDtypeStruct((N, 1), jnp.float32),
        grid_spec=pltpu.PrefetchScalarGridSpec(
            num_scalar_prefetch=0,
            grid=(grid_n, n_k),
            in_specs=[
                pl.BlockSpec((tile_n, tile_k), lambda i, k: (i, k)),   # xp
                pl.BlockSpec((tile_n, tile_k), lambda i, k: (i, k)),   # xe
                w_spec,                                                # w1a
                w_spec,                                                # w1b
                pl.BlockSpec((1, _HIDDEN), lambda i, k: (0, 0)),       # b1
                pl.BlockSpec((1, _HIDDEN), lambda i, k: (0, 0)),       # w2 row
                pl.BlockSpec(memory_space=pltpu.MemorySpace.SMEM),     # b2
            ],
            out_specs=pl.BlockSpec((tile_n, 1), lambda i, k: (i, 0)),
            scratch_shapes=scratch,
        ),
        compiler_params=pltpu.CompilerParams(
            dimension_semantics=("parallel", "arbitrary"),
            vmem_limit_bytes=vmem_limit,
        ),
    )(xp, xe, w1a, w1b, b1, w2_row, b2_s)

    return out.reshape(B, S, 1)


def init_params(key, vocab_size):
    """Deterministic init mimicking nn.Linear default (uniform +/- 1/sqrt(fan_in))."""
    k1, k2, k3, k4 = jax.random.split(key, 4)
    fan1 = vocab_size * 2
    lim1 = 1.0 / np.sqrt(fan1)
    w1 = jax.random.uniform(k1, (fan1, _HIDDEN), jnp.float32, -lim1, lim1)
    b1 = jax.random.uniform(k2, (1, _HIDDEN), jnp.float32, -lim1, lim1)
    fan2 = _HIDDEN
    lim2 = 1.0 / np.sqrt(fan2)
    w2 = jax.random.uniform(k3, (fan2, 1), jnp.float32, -lim2, lim2)
    b2 = jax.random.uniform(k4, (1, 1), jnp.float32, -lim2, lim2)
    return w1, b1, w2, b2


def _reference(predicted_probs, expected_probs, params):
    w1, b1, w2, b2 = params
    B, S, V = predicted_probs.shape
    combined = jnp.concatenate([predicted_probs, expected_probs], axis=-1)
    h = jnp.maximum(combined.reshape(-1, 2 * V) @ w1 + b1.reshape(1, -1), 0.0)
    return jax.nn.sigmoid(h @ w2 + b2).reshape(B, S, 1)


if __name__ == "__main__":
    key = jax.random.PRNGKey(0)

    # ---- Test 1: small vocab -> single-K fast path ----
    batch_size, seq_len, vocab_size = 2, 8, 32
    k_pred, k_tok, k_param, key = jax.random.split(key, 4)

    logits = jax.random.normal(k_pred, (batch_size, seq_len, vocab_size), jnp.float32)
    predicted_probs = jax.nn.softmax(logits, axis=-1)
    expected_token_ids = jax.random.randint(k_tok, (batch_size, seq_len), 0, vocab_size)
    expected_probs = jax.nn.one_hot(expected_token_ids, vocab_size, dtype=jnp.float32)
    params = init_params(k_param, vocab_size)

    score = self_eval_comparator(predicted_probs, expected_probs, params)
    jax.block_until_ready(score)
    ref = _reference(predicted_probs, expected_probs, params)
    assert score.shape == (batch_size, seq_len, 1)
    assert jnp.allclose(score, ref, atol=1e-5), "mismatch vs reference (single-K)"

    # ---- Test 2: vocab > tile_k -> multi-K accumulation, tail-K masking,
    #              resident weights (forced small tile_k for coverage) ----
    vocab_size2 = 200
    k_pred2, k_tok2, k_param2, key = jax.random.split(key, 4)
    logits2 = jax.random.normal(k_pred2, (batch_size, seq_len, vocab_size2), jnp.float32)
    predicted_probs2 = jax.nn.softmax(logits2, axis=-1)
    expected_token_ids2 = jax.random.randint(k_tok2, (batch_size, seq_len), 0, vocab_size2)
    expected_probs2 = jax.nn.one_hot(expected_token_ids2, vocab_size2, dtype=jnp.float32)
    params2 = init_params(k_param2, vocab_size2)

    score2 = self_eval_comparator(predicted_probs2, expected_probs2, params2,
                                  tile_k_max=128)
    jax.block_until_ready(score2)
    ref2 = _reference(predicted_probs2, expected_probs2, params2)
    assert jnp.allclose(score2, ref2, atol=1e-5), "mismatch vs reference (multi-K)"

    print("KERNEL_OK")
</pallas_src>

<mosaic_0001>
module attributes {stable_mosaic.version = 11 : i64} {
  func.func @_disc_kernel(%arg0: i32, %arg1: i32, %arg2: memref<8x32xf32, #tpu.memory_space<vmem>>, %arg3: memref<8x32xf32, #tpu.memory_space<vmem>>, %arg4: memref<32x64xf32, #tpu.memory_space<vmem>>, %arg5: memref<32x64xf32, #tpu.memory_space<vmem>>, %arg6: memref<1x64xf32, #tpu.memory_space<vmem>>, %arg7: memref<1x64xf32, #tpu.memory_space<vmem>>, %arg8: memref<1xf32, #tpu.memory_space<smem>>, %arg9: memref<8x1xf32, #tpu.memory_space<vmem>>) attributes {dimension_semantics = [#tpu.dimension_semantics<parallel>, #tpu.dimension_semantics<arbitrary>], iteration_bounds = array<i64: 2, 1>, scalar_prefetch = 0 : i64, scratch_operands = 0 : i64, tpu.core_type = #tpu.core_type<tc>, window_params = [{transform_indices = @transform_0, window_bounds = array<i64: 8, 32>}, {transform_indices = @transform_1, window_bounds = array<i64: 8, 32>}, {transform_indices = @transform_2, window_bounds = array<i64: 32, 64>}, {transform_indices = @transform_3, window_bounds = array<i64: 32, 64>}, {pipeline_mode = #tpu.pipeline_mode<synchronous>, transform_indices = @transform_4, window_bounds = array<i64: 1, 64>}, {pipeline_mode = #tpu.pipeline_mode<synchronous>, transform_indices = @transform_5, window_bounds = array<i64: 1, 64>}, {transform_indices = @transform_6, window_bounds = array<i64: 1>}, {transform_indices = @transform_7, window_bounds = array<i64: 8, 1>}]} {
    %c0 = arith.constant 0 : index
    %c0_0 = arith.constant 0 : index
    %0 = vector.load %arg2[%c0, %c0_0] : memref<8x32xf32, #tpu.memory_space<vmem>>, vector<8x32xf32>
    %c0_1 = arith.constant 0 : index
    %c0_2 = arith.constant 0 : index
    %1 = vector.load %arg3[%c0_1, %c0_2] : memref<8x32xf32, #tpu.memory_space<vmem>>, vector<8x32xf32>
    %c0_3 = arith.constant 0 : index
    %c0_4 = arith.constant 0 : index
    %2 = vector.load %arg4[%c0_3, %c0_4] : memref<32x64xf32, #tpu.memory_space<vmem>>, vector<32x64xf32>
    %c0_5 = arith.constant 0 : index
    %c0_6 = arith.constant 0 : index
    %3 = vector.load %arg5[%c0_5, %c0_6] : memref<32x64xf32, #tpu.memory_space<vmem>>, vector<32x64xf32>
    %cst = arith.constant dense<0.000000e+00> : vector<8x64xf32>
    %4 = tpu.matmul %0, %2, %cst {dimension_numbers = #tpu.dot_dimension_numbers<[1], [0], [0], [1], [0, 0, 1, 1], [], []>} : vector<8x32xf32>, vector<32x64xf32>, vector<8x64xf32> -> vector<8x64xf32>
    %cst_7 = arith.constant dense<0.000000e+00> : vector<8x64xf32>
    %5 = tpu.matmul %1, %3, %cst_7 {dimension_numbers = #tpu.dot_dimension_numbers<[1], [0], [0], [1], [0, 0, 1, 1], [], []>} : vector<8x32xf32>, vector<32x64xf32>, vector<8x64xf32> -> vector<8x64xf32>
    %6 = arith.addf %4, %5 : vector<8x64xf32>
    %c0_8 = arith.constant 0 : index
    %c0_9 = arith.constant 0 : index
    %7 = vector.load %arg6[%c0_8, %c0_9] : memref<1x64xf32, #tpu.memory_space<vmem>>, vector<1x64xf32>
    %8 = vector.broadcast %7 : vector<1x64xf32> to vector<8x64xf32>
    %9 = arith.addf %6, %8 : vector<8x64xf32>
    %cst_10 = arith.constant 0.000000e+00 : f32
    %10 = vector.broadcast %cst_10 : f32 to vector<8x64xf32>
    %11 = arith.maximumf %9, %10 : vector<8x64xf32>
    %c0_11 = arith.constant 0 : index
    %c0_12 = arith.constant 0 : index
    %12 = vector.load %arg7[%c0_11, %c0_12] : memref<1x64xf32, #tpu.memory_space<vmem>>, vector<1x64xf32>
    %13 = vector.broadcast %12 : vector<1x64xf32> to vector<8x64xf32>
    %14 = arith.mulf %11, %13 : vector<8x64xf32>
    %cst_13 = arith.constant dense<0.000000e+00> : vector<8xf32>
    %15 = vector.multi_reduction <add>, %14, %cst_13 [1] : vector<8x64xf32> to vector<8xf32>
    %16 = vector.shape_cast %15 : vector<8xf32> to vector<8x1xf32>
    %c0_14 = arith.constant 0 : index
    %17 = memref.load %arg8[%c0_14] : memref<1xf32, #tpu.memory_space<smem>>
    %18 = vector.broadcast %17 : f32 to vector<8x1xf32>
    %19 = arith.addf %16, %18 : vector<8x1xf32>
    %20 = math.absf %19 : vector<8x1xf32>
    %cst_15 = arith.constant 0.000000e+00 : f32
    %21 = vector.broadcast %cst_15 : f32 to vector<8x1xf32>
    %22 = arith.subf %21, %20 : vector<8x1xf32>
    %23 = math.exp %22 : vector<8x1xf32>
    %cst_16 = arith.constant 1.000000e+00 : f32
    %24 = vector.broadcast %cst_16 : f32 to vector<8x1xf32>
    %25 = arith.addf %24, %23 : vector<8x1xf32>
    %cst_17 = arith.constant 1.000000e+00 : f32
    %26 = vector.broadcast %cst_17 : f32 to vector<8x1xf32>
    %27 = arith.divf %26, %25 : vector<8x1xf32>
    %cst_18 = arith.constant 0.000000e+00 : f32
    %28 = vector.broadcast %cst_18 : f32 to vector<8x1xf32>
    %29 = arith.cmpf oge, %19, %28 : vector<8x1xf32>
    %cst_19 = arith.constant 1.000000e+00 : f32
    %30 = vector.broadcast %cst_19 : f32 to vector<8x1xf32>
    %31 = arith.subf %30, %27 : vector<8x1xf32>
    %32 = arith.select %29, %27, %31 : vector<8x1xi1>, vector<8x1xf32>
    %c0_20 = arith.constant 0 : index
    %c0_21 = arith.constant 0 : index
    %33 = vector.load %arg9[%c0_20, %c0_21] : memref<8x1xf32, #tpu.memory_space<vmem>>, vector<8x1xf32>
    tpu.vector_store %arg9[%c0_20, %c0_21], %32 {strides = array<i32>} : memref<8x1xf32, #tpu.memory_space<vmem>>, vector<8x1xf32>,
    return
  }
  func.func @transform_0(%arg0: i32, %arg1: i32) -> (i32, i32) {
    %c0_i32 = arith.constant 0 : i32
    return %arg0, %arg1 : i32, i32
  }
  func.func @transform_1(%arg0: i32, %arg1: i32) -> (i32, i32) {
    %c0_i32 = arith.constant 0 : i32
    return %arg0, %arg1 : i32, i32
  }
  func.func @transform_2(%arg0: i32, %arg1: i32) -> (i32, i32) {
    %c0_i32 = arith.constant 0 : i32
    %c0_i32_0 = arith.constant 0 : i32
    return %arg1, %c0_i32 : i32, i32
  }
  func.func @transform_3(%arg0: i32, %arg1: i32) -> (i32, i32) {
    %c0_i32 = arith.constant 0 : i32
    %c0_i32_0 = arith.constant 0 : i32
    return %arg1, %c0_i32 : i32, i32
  }
  func.func @transform_4(%arg0: i32, %arg1: i32) -> (i32, i32) {
    %c0_i32 = arith.constant 0 : i32
    %c0_i32_0 = arith.constant 0 : i32
    %c0_i32_1 = arith.constant 0 : i32
    return %c0_i32, %c0_i32_0 : i32, i32
  }
  func.func @transform_5(%arg0: i32, %arg1: i32) -> (i32, i32) {
    %c0_i32 = arith.constant 0 : i32
    %c0_i32_0 = arith.constant 0 : i32
    %c0_i32_1 = arith.constant 0 : i32
    return %c0_i32, %c0_i32_0 : i32, i32
  }
  func.func @transform_6(%arg0: i32, %arg1: i32) -> i32 {
    %c0_i32 = arith.constant 0 : i32
    %c0_i32_0 = arith.constant 0 : i32
    return %c0_i32 : i32
  }
  func.func @transform_7(%arg0: i32, %arg1: i32) -> (i32, i32) {
    %c0_i32 = arith.constant 0 : i32
    %c0_i32_0 = arith.constant 0 : i32
    return %arg0, %c0_i32 : i32, i32
  }
}

</mosaic_0001>

<bundles_post_ra>
// kernel: tpu_custom_call.1
= control target key start
LH: loop header
LB: loop body
LE: loop exit
PB: predicated region body
PF: predicated region fallthrough
CT: control target
= control target key end

     0   :  { %s1252_s0 = inlined_call_operand.hbm [shape: f32[16,32], index: 0, kind: input, shape index: {}]   ;;  %s1253_s1 = inlined_call_operand.hbm [shape: f32[16,32], index: 1, kind: input, shape index: {}]   ;;  %s1254_s2 = inlined_call_operand.hbm [shape: f32[32,64], index: 2, kind: input, shape index: {}]   ;;  %s1255_s3 = inlined_call_operand.hbm [shape: f32[32,64], index: 3, kind: input, shape index: {}]   ;;  %s1256_s4 = inlined_call_operand.vmem [shape: f32[1,64], index: 4, kind: input, shape index: {}]   ;;  %s1257_s5 = inlined_call_operand.vmem [shape: f32[1,64], index: 5, kind: input, shape index: {}]   ;;  %s1258_s6 = inlined_call_operand.<no memory space> [shape: f32[1], index: 6, kind: input, shape index: {}]   ;;  %s1259_s7 = inlined_call_operand.vmem [shape: f32[16,1], index: 7, kind: output, shape index: {}]  }
   0x1   :  { %1263 = sst [smem:[#allocation14_spill]] %s1252_s0 }
   0x2   :  { %12 = sst [smem:[#allocation2]] %s1258_s6 }
   0x3   :  { %13 = vsyncpa [#allocation4], 0 }
   0x4   :  { %15 = vsyncpa [#allocation4 + $0x1], 0 }
   0x5   :  { %16 = vsyncpa [#allocation6], 0 }
   0x6   :  { %18 = vsyncpa [#allocation6 + $0x1], 0 }
   0x7   :  { %19 = vsyncpa [#allocation9], 0  ;;  %s1077_s26 = smov 0   ;;  %s1079_s27 = smov 0  }
   0x8   :  { %s1081_s28 = smov 0   ;;  %s1083_s29 = smov 0  }
   0x9   :  { %s1085_s30 = smov 0   ;;  %s1087_s8 = smov 0  }
   0xa LB: > { %s1262_s6 = sadd.s32 4294967295, %s1024_s8   ;;  %p59_p0 = scmp.ne.s32.totalorder %s1008_s27, %s1004_s26  ;;  %s1024_s8 = sphi %s1087_s8, %s25_s8   ;;  %s1020_s30 = sphi %s1085_s30, %s1276_s30   ;;  %s1016_s29 = sphi %s1083_s29, %s1275_s29   ;;  %s1012_s28 = sphi %s1081_s28, %s1274_s28   ;;  %s1008_s27 = sphi %s1079_s27, %s1273_s27   ;;  %s1004_s26 = sphi %s1077_s26, %s1272_s26  }
   0xb   : > { %p1109_p1 = scmp.eq.s32.totalorder %s1262_s6, 0  ;;  %p713_p2 = scmp.ge.s32.totalorder %s1024_s8, 1 }
   0xc   : > { %p239_p3 = scmp.lt.s32.totalorder %s1024_s8, 3  ;;  %s1026_s12 = smov [#allocation7]  }
   0xd   : > { %s1264_s9 = scalar_select %p1109_p1, 1, 0 }
   0xe   : > { %p1117_p4 = por %p1109_p1, %p59_p0  ;;  %p1121_p5 = pnand %p713_p2, %p239_p3 }
   0xf   : > { %s254_s13 = sshll.u32 %s1026_s12, 4  ;;  %s1027_s15 = smov [#allocation8]   ;;  %s255_s13 = int_to_ptr.vmem [resolvable:$true] %s254_s13 }
  0x10   : > { %p777_p6 = pneg %p1121_p5  ;;  %s270_s16 = sshll.u32 %s1027_s15, 4  ;;  %s271_s16 = int_to_ptr.vmem [resolvable:$true] %s270_s16 }
  0x11   : > { %s865_s17 = scalar_lea.vmem %s255_s13, 512  ;;  %p873_p12 = scmp.lt.s32.totalorder %s255_s13, %s255_s13 }
  0x12   : > { %p1129_p7 = pnand %p777_p6, %p1109_p1  ;;  %p866_p9 = scmp.ne.s32.totalorder %s255_s13, %s865_s17 }
  0x13   : > { %p874_p13 = scmp.lt.s32.totalorder %s865_s17, %s865_s17 }
  0x14   : > { %p856_p8 = pneg %p1129_p7 }
  0x15   : > { %p875_p0 = por %p874_p13, %p873_p12 }
  0x16   : > { %p868_p10 = pnand %p866_p9, %p856_p8 }
  0x18   : > { %p869_p11 = pneg %p868_p10 }
  0x1a   : > { %p876_p2 = pnand %p875_p0, %p869_p11 }
  0x1c   : > { %879 = shalt.err (!%p876_p2)
}
  0x1d   : > { %s1028_s18 = smov 128   ;;  %s1029_s19 = smov 8  }
  0x1e   : > { %780 = dma.hbm_to_vmem [thread:$0]  (!%p1129_p7), %s1254_s2, 512, %s255_s13, [#allocation6], %s1028_s18, %s1028_s18, %s1029_s19  }
  0x1f   : > { %s891_s22 = scalar_lea.vmem %s271_s16, 512  ;;  %p899_p10 = scmp.lt.s32.totalorder %s271_s16, %s271_s16 }
  0x20   : > { %p892_p3 = scmp.ne.s32.totalorder %s271_s16, %s891_s22  ;;  %p900_p1 = scmp.lt.s32.totalorder %s891_s22, %s891_s22 }
  0x22   : > { %p894_p6 = pnand %p892_p3, %p856_p8  ;;  %p901_p12 = por %p900_p1, %p899_p10 }
  0x24   : > { %p895_p9 = pneg %p894_p6 }
  0x26   : > { %p902_p11 = pnand %p901_p12, %p895_p9 }
  0x28   : > { %905 = shalt.err (!%p902_p11)
}
  0x29   : > { %783 = dma.hbm_to_vmem [thread:$0]  (!%p1129_p7), %s1255_s3, 512, %s271_s16, [#allocation9], %s1028_s18, %s1028_s18, %s1029_s19  }
  0x2a   : > { %s37_s25 = sadd.s32 1, %s1020_s30  ;;  %s46_s26 = sadd.s32 1, %s1012_s28 }
  0x2b   : > { %p39_p1 = scmp.ge.s32.totalorder %s37_s25, 2  ;;  %p53_p8 = scmp.ne.s32.totalorder %s1012_s28, %s1008_s27 }
  0x2c   : > { %p54_p13 = scmp.eq.s32.totalorder %s1024_s8, 0  ;;  %p793_p0 = scmp.lt.s32.totalorder %s1024_s8, 2 }
  0x2d   : > { %s1278_s25 = smov (%p39_p1, %s37_s25), 0  ;;  %s293_s12 = sand.u32 1, %s1012_s28  }
  0x2e   : > { %p55_p2 = por %p54_p13, %p53_p8  ;;  %s41_s13 = ssub.s32 %s1020_s30, %s1278_s25 }
  0x2f   : > { %p44_p3 = scmp.eq.s32.totalorder %s41_s13, 0  ;;  %s717_s14 = sshll.u32 %s293_s12, 3 }
  0x30   : > { %s718_s15 = sshll.u32 %s1020_s30, 7  ;;  %s1268_s0 = sld [smem:[#allocation14_spill]] }
  0x31   : > { %s1164_s17 = scalar_select %p44_p3, %s1012_s28, %s46_s26  }
  0x32   : > { %s297_s20 = scalar_lea.vmem [#allocation3], %s717_s14  ;;  %p1171_p7 = pnand %p793_p0, %p55_p2 }
  0x33   : > { %s305_s21 = sshll.u32 %s297_s20, 4  ;;  %s1178_s13 = scalar_lea.hbm %s1253_s1, %s718_s15  ;;  %s306_s21 = int_to_ptr.vmem [resolvable:$true] %s305_s21 }
  0x34   : > { %s312_s26 = sand.u32 1, %s1024_s8   ;;  %s294_s6 = scalar_lea.sflag [#allocation4], %s293_s12 }
  0x35   : > { %p908_p6 = pneg %p1171_p7  ;;  %s919_s16 = scalar_lea.vmem %s306_s21, 128 }
  0x36   : > { %s303_s19 = scalar_lea.hbm %s1268_s0, %s718_s15  ;;  %p920_p9 = scmp.ne.s32.totalorder %s306_s21, %s919_s16 }
  0x37   : > { %s1030_s18 = smov [#allocation3]  }
  0x38   : > { %p922_p10 = pnand %p920_p9, %p908_p6  ;;  %s924_s20 = sshll.u32 %s1030_s18, 4  ;;  %s925_s20 = int_to_ptr.vmem [resolvable:$false] %s924_s20 }
  0x39   : > { %s926_s0 = scalar_lea.vmem %s925_s20, 256  ;;  %p927_p11 = scmp.lt.s32.totalorder %s306_s21, %s925_s20 }
  0x3a   : > { %p923_p12 = pneg %p922_p10  ;;  %p928_p1 = scmp.lt.s32.totalorder %s926_s0, %s919_s16 }
  0x3c   : > { %p929_p8 = por %p928_p1, %p927_p11 }
  0x3e   : > { %p930_p13 = pnand %p929_p8, %p923_p12 }
  0x40   : > { %933 = shalt.err (!%p930_p13)
}
  0x41   : > { %787 = dma.hbm_to_vmem [thread:$0]  (!%p1171_p7), %s303_s19, 128, %s306_s21, %s294_s6  }
  0x42   : > { %s316_s12 = scalar_lea.vmem [#allocation5], %s717_s14  ;;  %s313_s23 = scalar_lea.sflag [#allocation6], %s312_s26 }
  0x43   : > { %s324_s15 = sshll.u32 %s316_s12, 4  ;;  %s1031_s18 = smov [#allocation5]   ;;  %s325_s15 = int_to_ptr.vmem [resolvable:$true] %s324_s15 }
  0x44   : > { %s947_s24 = scalar_lea.vmem %s325_s15, 128  ;;  %s952_s20 = sshll.u32 %s1031_s18, 4  ;;  %s953_s20 = int_to_ptr.vmem [resolvable:$false] %s952_s20 }
  0x45   : > { %p948_p0 = scmp.ne.s32.totalorder %s325_s15, %s947_s24  ;;  %s954_s0 = scalar_lea.vmem %s953_s20, 256 }
  0x46   : > { %p955_p9 = scmp.lt.s32.totalorder %s325_s15, %s953_s20  ;;  %p956_p10 = scmp.lt.s32.totalorder %s954_s0, %s947_s24 }
  0x47   : > { %p950_p2 = pnand %p948_p0, %p908_p6 }
  0x48   : > { %p957_p12 = por %p956_p10, %p955_p9 }
  0x49   : > { %p951_p3 = pneg %p950_p2 }
  0x4b   : > { %p958_p11 = pnand %p957_p12, %p951_p3 }
  0x4d   : > { %961 = shalt.err (!%p958_p11)
}
  0x4e   : > { %790 = dma.hbm_to_vmem [thread:$0]  (!%p1171_p7), %s1178_s13, 128, %s325_s15, %s313_s23  }
  0x4f   : > { %333 = sbr.rel (%p1121_p5) target bundleno = 486 (0x1e6), region = 48  ;;  %s335_s6 = sand.u32 (!%p1121_p5), 1, %s1008_s27  }
  0x50   : > { %s1197_s14 = sshll.u32 (!%p1121_p5), %s335_s6, 3  ;;  %s336_s19 = scalar_lea.sflag (!%p1121_p5), [#allocation4], %s335_s6 }
  0x51   : > { %s339_s21 = scalar_lea.vmem (!%p1121_p5), [#allocation3], %s1197_s14 }
  0x54   : > { %987 = dma.done.wait (%p1117_p4), %s336_s19, 128  }
  0x55   : > { %989 = vsyncadd (%p1117_p4), %s336_s19, 4294967168  ;;  %s1270_s22 = sadd.s32 4294967295, %s1024_s8   ;;  %s348_s26 = scalar_lea.vmem [#allocation5], %s1197_s14 }
  0x56   : > { %s344_s13 = sand.u32 1, %s1270_s22  }
  0x57   : > { %s345_s11 = scalar_lea.sflag [#allocation6], %s344_s13 }
  0x58   : > { %991 = dma.done.wait (%p1117_p4), %s345_s11, 128  }
  0x59   : > { %993 = vsyncadd (%p1117_p4), %s345_s11, 4294967168  ;;  %p1271_p5 = scmp.ne.s32.totalorder %s1264_s9, 0 }
  0x5b   : > { %995 = dma.done.wait (%p1271_p5), [#allocation6], 512  }
  0x5c   : > { %997 = vsyncadd (%p1271_p5), [#allocation6], 4294966784 }
  0x5d   : > { %999 = dma.done.wait (%p1271_p5), [#allocation9], 512  }
  0x5e   : > { %1001 = vsyncadd (%p1271_p5), [#allocation9], 4294966784  ;;  %v1032_v0 = vmov 0.0   ;;  %vm1033_vm0 = vmmov 0   ;;  %v406_v1 = vld [vmem:[#allocation8 + $0x18] sm:$0xff]  ;;  %v405_v3 = vld [vmem:[#allocation8 + $0x10] sm:$0xff] }
  0x5f   : > { %743 = vmatprep.subr.mxu0 %v1032_v0  ;;  %754 = vmatprep.subr.mxu1 %v1032_v0  ;;  %v402_v2 = vld [vmem:[#allocation7 + $0x18] sm:$0xff]  ;;  %v401_v4 = vld [vmem:[#allocation7 + $0x10] sm:$0xff]  ;;  %v404_v5 = vld [vmem:[#allocation8 + $0x8] sm:$0xff]  ;;  %vm407_vm1 = vcmask 261120   ;;  %vm571_vm2 = vcmask 523264   ;;  %s575_s15 = sld [smem:[#allocation2]] }
  0x60   : > { %751 = vmatprep.mubr.msk.f32.mxu0 %vm1033_vm0, %v1032_v0  ;;  %762 = vmatprep.mubr.msk.f32.mxu1 %vm1033_vm0, %v1032_v0  ;;  %v400_v6 = vld [vmem:[#allocation7 + $0x8] sm:$0xff]  ;;  %v403_v7 = vld [vmem:[#allocation8] sm:$0xff]  ;;  %v398_v9 = vld [vmem:[%s348_s26] sm:$0xff]  ;;  %p393_p4 = scmp.lt.s32.totalorder %s1016_s29, 1  ;;  %vm588_vm3 = vcmask 7168  }
  0x61   : > { %744 = vmatpush3.msra.mxu0 %v406_v1  ;;  %755 = vmatpush3.msra.mxu1 %v402_v2  ;;  %v399_v8 = vld [vmem:[#allocation7] sm:$0xff] }
  0x62   : > { %745 = vmatprep.subr.mxu0 %v1032_v0  ;;  %756 = vmatprep.subr.mxu1 %v1032_v0  ;;  %v397_v10 = vld [vmem:[%s339_s21] sm:$0xff]  ;;  %s1280_s29 = smov (!%p393_p4, %s1016_s29), 1 }
  0x63   : > { %746 = vmatpush3.msra.mxu0 %v405_v3  ;;  %757 = vmatpush3.msra.mxu1 %v401_v4  ;;  %v729_v13 = vld [vmem:[%s1256_s4] ss:$0 sm:$0xff]  ;;  %s726_s23 = sshll.u32 %s1280_s29, 3 }
  0x64   : > { %747 = vmatprep.subr.mxu0 %v1032_v0  ;;  %758 = vmatprep.subr.mxu1 %v1032_v0  ;;  %v730_v18 = vld [vmem:[%s1257_s5] ss:$0 sm:$0xff]  ;;  %s396_s20 = scalar_lea.vmem %s1259_s7, %s726_s23 }
  0x65   : > { %748 = vmatpush3.msra.mxu0 %v404_v5  ;;  %759 = vmatpush3.msra.mxu1 %v400_v6  ;;  %v576_v22 = vstv %s575_s15 }
  0x66   : > { %749 = vmatprep.subr.mxu0 %v1032_v0  ;;  %760 = vmatprep.subr.mxu1 %v1032_v0 }
  0x67   : > { %750 = vmatpush3.msra.mxu0 %v403_v7  ;;  %761 = vmatpush3.msra.mxu1 %v399_v8 }
  0x68   : > { %752 = vmatmul.mubr.msk.f32.vlgmr.msra.gmra.mxu0 %vm407_vm1, %v398_v9  ;;  %763 = vmatmul.mubr.msk.f32.vlgmr.msra.gmra.mxu1 %vm407_vm1, %v397_v10 }
 0x128   : > { %v477_v11 = vpop.f32.mrf.mxu0  ;;  %v550_v12 = vpop.f32.mrf.mxu1 }
 0x129   : > { %v551_v14 = vadd.f32 %v550_v12, %v477_v11 }
 0x12a   : > { %v753_v15 = vpop.f32.mrf.mxu0  ;;  %v764_v16 = vpop.f32.mrf.mxu1 }
 0x12b   : > { %v561_v17 = vadd.f32 %v729_v13, %v551_v14 }
 0x12d   : > { %v562_v19 = vmax.f32 %v561_v17, 0.0 }
 0x12f   : > { %v570_v20 = vmul.f32 %v730_v18, %v562_v19 }
 0x131   : > { %v572_v21 = vsel %vm571_vm2, %v570_v20, 0.0 }
 0x132   : > { %573 = vadd.xlane.f32.xlu0 %v572_v21 }
 0x1bb   : > { %v574_v23 = vpop.xlane.xlu0 %573 }
 0x1bc   : > { %v577_v24 = vadd.f32 %v576_v22, %v574_v23 }
 0x1be   : > { %v578_v25 = vand.u32 2147483647, %v577_v24  ;;  %vm585_vm4 = vcmp.ge.f32.partialorder %v577_v24, 0.0 }
 0x1c0   : > { %v579_v26 = vsub.f32 0.0, %v578_v25 }
 0x1c2   : > { %v580_v27 = vmul.f32 1.442695, %v579_v26 }
 0x1c4   : > { %850 = vpow2.f32 %v580_v27 }
 0x1d1   : > { %v851_v28 = vpop.eup %850 }
 0x1d2   : > { %v582_v29 = vadd.f32 1.0, %v851_v28 }
 0x1d4   : > { %852 = vrcp.f32 %v582_v29 }
 0x1e1   : > { %v853_v30 = vpop.eup %852 }
 0x1e2   : > { %v586_v31 = vsub.f32 1.0, %v853_v30 }
 0x1e4   : > { %v587_v32 = vsel %vm585_vm4, %v853_v30, %v586_v31 }
 0x1e5   : > { %589 = vst.msk [vmem:[%s396_s20] sm:$0xff] %vm588_vm3, %v587_v32 }
 0x1e6 PF: > { %s25_s8 = sadd.s32 1, %s1024_s8   ;;  %s1272_s26 = smov %s1008_s27 }
 0x1e7   : > { %p22_p7 = scmp.ge.s32.totalorder %s25_s8, 4   ;;  %s1273_s27 = smov %s1012_s28 }
 0x1e8   : > { %s1274_s28 = smov %s1164_s17  ;;  %s1275_s29 = smov %s1020_s30 }
 0x1e9   : > { %s1276_s30 = smov %s1278_s25  ;;  %24 = sbr.rel (!%p22_p7) target bundleno = 10 (0xa), region = 111 }
 0x1ee   :  { %609 = vsyncpa [#allocation4], 1 }
 0x1ef   :  { %611 = vsyncpa [#allocation4 + $0x1], 1 }
 0x1f0   :  { %612 = vsyncpa [#allocation6], 1 }
 0x1f1   :  { %614 = vsyncpa [#allocation6 + $0x1], 1 }
 0x1f2   :  { %615 = vsyncpa [#allocation9], 1 }

</bundles_post_ra>
